<compile_context>
chip_gen: v6e
topology: v6e:2x2x1
jax: 0.10.0
libtpu: 0.0.40
codegen_flags: <defaults>
</compile_context>

<pallas_src>
import jax
import jax.numpy as jnp
from jax.experimental import pallas as pl
from jax.experimental.pallas import tpu as pltpu

F_IN = 8      # California housing has 8 features (X.shape[1])
H1 = 64
H2 = 32
OUT = 1

# Offsets into the packed (w3 | b2 | b3) auxiliary column vector (all 8-aligned).
_W3_OFF = 0
_B2_OFF = H2
_B3_OFF = 2 * H2
_AUX_ROWS = 2 * H2 + OUT          # 65

# Default lane-tile cap: ~6 MiB live VMEM (f32 h1/h2 temporaries dominate),
# safe under the default scoped-VMEM limit on v5e/v6e/v7x.  On v5e/v6e
# (128 MiB VMEM) 16K-32K tiles are also fine via the `tm=` override.
_TM_CAP = 8192


def housing_mlp_kernel(xa_ref, w1a_ref, w2t_ref, aux_ref, o_ref):
    """One batch tile: x_aug^T (F_IN+1, tm) -> y^T (1, tm), everything lane-dense."""
    w3 = aux_ref[_W3_OFF:_W3_OFF + H2, :]                 # (H2, 1)  f32
    b2 = aux_ref[_B2_OFF:_B2_OFF + H2, :]                 # (H2, 1)  f32
    b3 = aux_ref[_B3_OFF:_B3_OFF + OUT, :]                # (1, 1)   f32

    # fc1 (bias folded into the extra weight column / ones input row):
    # (H1, F_IN+1) @ (F_IN+1, tm) -> (H1, tm); batch is the MXU N dimension.
    h1 = jnp.dot(w1a_ref[...], xa_ref[...], preferred_element_type=jnp.float32)
    h1 = jnp.maximum(h1, 0.0)                             # ReLU (f32 on VPU)
    # dropout1: identity at inference time.
    # TODO(synk): training-mode dropout would need pltpu.prng_seed/prng_random_bits masking.

    # fc2: (H2, H1) @ (H1, tm) -> (H2, tm); bf16 into the MXU, f32 accumulate.
    h2 = jnp.dot(w2t_ref[...], h1.astype(jnp.bfloat16),
                 preferred_element_type=jnp.float32) + b2
    h2 = jnp.maximum(h2, 0.0)                             # ReLU
    # dropout2: identity at inference time.

    # fc3 (32 -> 1): VPU broadcast-multiply + XLU cross-sublane reduce
    # (an N=1 matmul would waste the MXU; XLU/EUP have slack here).
    y = jnp.sum(h2 * w3, axis=0, keepdims=True) + b3      # (1, tm)  f32

    o_ref[...] = y.astype(o_ref.dtype)                    # lane-dense store


def prepare_features(x_rows):
    """One-time layout plumbing — do this OUTSIDE the hot loop.

    (B, F_IN) f32 row-major  ->  (F_IN+1, B) bf16 feature-major whose trailing
    row is all ones (folds fc1's bias into the matmul).
    """
    B = x_rows.shape[0]
    xt = jnp.transpose(x_rows)                                   # (F_IN, B)
    ones = jnp.ones((1, B), x_rows.dtype)
    return jnp.concatenate([xt, ones], axis=0).astype(jnp.bfloat16)


def pack_params(p):
    """Pack torch-layout params into the kernel's resident operands (tiny, ~5 KB)."""
    w1a = jnp.concatenate(
        [p["w1"], p["b1"].reshape(H1, 1)], axis=1).astype(jnp.bfloat16)   # (H1, F_IN+1)
    w2t = p["w2"].astype(jnp.bfloat16)                                    # (H2, H1)
    aux = jnp.concatenate(
        [p["w3"].reshape(OUT, H2).T,          # (H2, 1)
         p["b2"].reshape(H2, 1),
         p["b3"].reshape(OUT, 1)], axis=0).astype(jnp.float32)            # (65, 1)
    return w1a, w2t, aux


def _auto_tile(B, tm):
    if tm is None:
        tm = B if B <= _TM_CAP else _TM_CAP
    tm = min(tm, B)
    if tm != B and tm % 128 != 0:
        raise ValueError("tm must be a multiple of 128 (lane axis) or equal to B")
    return tm


def housing_nn_forward(xt, params, *, tm=None):
    """HousingNN eval-mode forward via one fused Pallas kernel.

    xt:     (F_IN+1, B) bfloat16 feature-major slab with trailing ones row
            (from `prepare_features`; build it once, outside the timed path).
    params: dict in torch layout: w1 (H1,F_IN), b1 (H1,), w2 (H2,H1), b2 (H2,),
            w3 (OUT,H2), b3 (OUT,).
    tm:     batch tile on the lane axis (multiple of 128, or B).  Default: up
            to 8192.  On v5e/v6e, 16384-32768 amortizes step overhead further.

    Returns (B, OUT) float32.
    """
    Fp1, B = xt.shape
    if Fp1 != F_IN + 1:
        raise ValueError(f"xt must be (F_IN+1, B) = ({F_IN + 1}, B), got {xt.shape}")
    if xt.dtype != jnp.bfloat16:
        raise ValueError("xt must be bfloat16 (see prepare_features)")

    w1a, w2t, aux = pack_params(params)
    assert aux.shape == (_AUX_ROWS, 1)

    tm_ = _auto_tile(B, tm)
    n_tiles = pl.cdiv(B, tm_)

    flops = 2 * B * (H1 * (F_IN + 1) + H2 * H1 + H2)
    bytes_accessed = xt.size * 2 + B * OUT * 4 + (w1a.size + w2t.size) * 2 + aux.size * 4

    def resident(arr):
        return pl.BlockSpec(arr.shape, lambda i: (0, 0))

    out_t = pl.pallas_call(
        housing_mlp_kernel,
        out_shape=jax.ShapeDtypeStruct((OUT, B), jnp.float32),
        grid_spec=pl.GridSpec(
            grid=(n_tiles,),
            in_specs=[
                pl.BlockSpec((F_IN + 1, tm_), lambda i: (0, i)),   # x^T: tiled on lanes
                resident(w1a), resident(w2t), resident(aux),        # params stay in VMEM
            ],
            out_specs=pl.BlockSpec((OUT, tm_), lambda i: (0, i)),   # lane-dense (1, tm) slab
        ),
        compiler_params=pltpu.CompilerParams(
            dimension_semantics=("parallel",),                      # megacore shards the batch
            vmem_limit_bytes=(48 << 20) if tm_ > 8192 else None,    # only needed for huge tiles
        ),
        cost_estimate=pl.CostEstimate(
            flops=flops, transcendentals=0, bytes_accessed=bytes_accessed),
    )(xt, w1a, w2t, aux)

    return out_t.reshape(B, OUT)


def init_params(key):
    """Deterministic PyTorch nn.Linear-style init, stored in torch (out, in) layout."""
    ks = jax.random.split(key, 6)

    def u(k, shape, fan_in):
        bound = 1.0 / (fan_in ** 0.5)
        return jax.random.uniform(k, shape, jnp.float32, -bound, bound)

    return {
        "w1": u(ks[0], (H1, F_IN), F_IN), "b1": u(ks[1], (H1,), F_IN),
        "w2": u(ks[2], (H2, H1), H1),     "b2": u(ks[3], (H2,), H1),
        "w3": u(ks[4], (OUT, H2), H2),    "b3": u(ks[5], (OUT,), H2),
    }


def reference_forward_f32(x, p):
    """Pure-f32 reference matching the PyTorch module exactly."""
    h1 = jnp.maximum(x @ p["w1"].T + p["b1"], 0.0)
    h2 = jnp.maximum(h1 @ p["w2"].T + p["b2"], 0.0)
    return h2 @ p["w3"].T + p["b3"]


def reference_forward_mixed(x, p):
    """Pure-JAX reference mirroring the kernel's mixed precision (bf16 feeds, bias fold)."""
    B = x.shape[0]
    xa = jnp.concatenate([x, jnp.ones((B, 1), x.dtype)], axis=1).astype(jnp.bfloat16)
    w1a = jnp.concatenate([p["w1"], p["b1"].reshape(H1, 1)], axis=1).astype(jnp.bfloat16)
    h1 = jnp.maximum(
        jnp.dot(xa, w1a.T, preferred_element_type=jnp.float32), 0.0)
    h2 = jnp.maximum(
        jnp.dot(h1.astype(jnp.bfloat16), p["w2"].astype(jnp.bfloat16).T,
                preferred_element_type=jnp.float32) + p["b2"], 0.0)
    return h2 @ p["w3"].T + p["b3"]


if __name__ == "__main__":
    key = jax.random.PRNGKey(0)
    k_x, k_p = jax.random.split(key)
    params = init_params(k_p)

    # Case 0: clean single full-width tile.  Case 1: multi-tile grid with a
    # ragged (masked) last tile.  Real Cal-housing (~20k rows) uses the 8192 cap.
    cases = ((512, None), (1152, 512))
    for case, (B, tm) in enumerate(cases):
        x_rows = jax.random.normal(jax.random.fold_in(k_x, case), (B, F_IN), jnp.float32)
        xt = prepare_features(x_rows)      # one-time layout/cast, outside the hot path

        out = jax.block_until_ready(housing_nn_forward(xt, params, tm=tm))
        assert out.shape == (B, OUT)

        ref_m = reference_forward_mixed(x_rows, params)
        ref_f = reference_forward_f32(x_rows, params)
        assert jnp.allclose(out, ref_m, atol=2e-3, rtol=2e-3), (
            "mixed-precision mismatch", float(jnp.max(jnp.abs(out - ref_m))))
        assert jnp.allclose(out, ref_f, atol=5e-2), (
            "f32 mismatch", float(jnp.max(jnp.abs(out - ref_f))))

    print("KERNEL_OK")
</pallas_src>

<mosaic_0001>
module attributes {stable_mosaic.version = 11 : i64} {
  func.func @housing_mlp_kernel(%arg0: i32, %arg1: memref<9x512xbf16, #tpu.memory_space<vmem>>, %arg2: memref<64x9xbf16, #tpu.memory_space<vmem>>, %arg3: memref<32x64xbf16, #tpu.memory_space<vmem>>, %arg4: memref<65x1xf32, #tpu.memory_space<vmem>>, %arg5: memref<1x512xf32, #tpu.memory_space<vmem>>) attributes {dimension_semantics = [#tpu.dimension_semantics<parallel>], iteration_bounds = array<i64: 1>, scalar_prefetch = 0 : i64, scratch_operands = 0 : i64, tpu.core_type = #tpu.core_type<tc>, window_params = [{transform_indices = @transform_0, window_bounds = array<i64: 9, 512>}, {pipeline_mode = #tpu.pipeline_mode<synchronous>, transform_indices = @transform_1, window_bounds = array<i64: 64, 9>}, {pipeline_mode = #tpu.pipeline_mode<synchronous>, transform_indices = @transform_2, window_bounds = array<i64: 32, 64>}, {pipeline_mode = #tpu.pipeline_mode<synchronous>, transform_indices = @transform_3, window_bounds = array<i64: 65, 1>}, {transform_indices = @transform_4, window_bounds = array<i64: 1, 512>}]} {
    %c0 = arith.constant 0 : index
    %c0_0 = arith.constant 0 : index
    %0 = vector.load %arg4[%c0, %c0_0] : memref<65x1xf32, #tpu.memory_space<vmem>>, vector<32x1xf32>
    %c32 = arith.constant 32 : index
    %c0_1 = arith.constant 0 : index
    %1 = vector.load %arg4[%c32, %c0_1] : memref<65x1xf32, #tpu.memory_space<vmem>>, vector<32x1xf32>
    %c64 = arith.constant 64 : index
    %c0_2 = arith.constant 0 : index
    %2 = vector.load %arg4[%c64, %c0_2] : memref<65x1xf32, #tpu.memory_space<vmem>>, vector<1x1xf32>
    %c0_3 = arith.constant 0 : index
    %c0_4 = arith.constant 0 : index
    %3 = vector.load %arg2[%c0_3, %c0_4] : memref<64x9xbf16, #tpu.memory_space<vmem>>, vector<64x9xbf16>
    %c0_5 = arith.constant 0 : index
    %c0_6 = arith.constant 0 : index
    %4 = vector.load %arg1[%c0_5, %c0_6] : memref<9x512xbf16, #tpu.memory_space<vmem>>, vector<9x512xbf16>
    %cst = arith.constant dense<0.000000e+00> : vector<64x512xf32>
    %5 = tpu.matmul %3, %4, %cst {dimension_numbers = #tpu.dot_dimension_numbers<[1], [0], [0], [1], [0, 0, 1, 1], [], []>} : vector<64x9xbf16>, vector<9x512xbf16>, vector<64x512xf32> -> vector<64x512xf32>
    %cst_7 = arith.constant 0.000000e+00 : f32
    %6 = vector.broadcast %cst_7 : f32 to vector<64x512xf32>
    %7 = arith.maximumf %5, %6 : vector<64x512xf32>
    %c0_8 = arith.constant 0 : index
    %c0_9 = arith.constant 0 : index
    %8 = vector.load %arg3[%c0_8, %c0_9] : memref<32x64xbf16, #tpu.memory_space<vmem>>, vector<32x64xbf16>
    %9 = arith.truncf %7 : vector<64x512xf32> to vector<64x512xbf16>
    %cst_10 = arith.constant dense<0.000000e+00> : vector<32x512xf32>
    %10 = tpu.matmul %8, %9, %cst_10 {dimension_numbers = #tpu.dot_dimension_numbers<[1], [0], [0], [1], [0, 0, 1, 1], [], []>} : vector<32x64xbf16>, vector<64x512xbf16>, vector<32x512xf32> -> vector<32x512xf32>
    %11 = vector.broadcast %1 : vector<32x1xf32> to vector<32x512xf32>
    %12 = arith.addf %10, %11 : vector<32x512xf32>
    %cst_11 = arith.constant 0.000000e+00 : f32
    %13 = vector.broadcast %cst_11 : f32 to vector<32x512xf32>
    %14 = arith.maximumf %12, %13 : vector<32x512xf32>
    %15 = vector.broadcast %0 : vector<32x1xf32> to vector<32x512xf32>
    %16 = arith.mulf %14, %15 : vector<32x512xf32>
    %cst_12 = arith.constant dense<0.000000e+00> : vector<512xf32>
    %17 = vector.multi_reduction <add>, %16, %cst_12 [0] : vector<32x512xf32> to vector<512xf32>
    %18 = vector.shape_cast %17 : vector<512xf32> to vector<1x512xf32>
    %19 = vector.broadcast %2 : vector<1x1xf32> to vector<1x512xf32>
    %20 = arith.addf %18, %19 : vector<1x512xf32>
    %c0_13 = arith.constant 0 : index
    %c0_14 = arith.constant 0 : index
    %21 = vector.load %arg5[%c0_13, %c0_14] : memref<1x512xf32, #tpu.memory_space<vmem>>, vector<1x512xf32>
    tpu.vector_store %arg5[%c0_13, %c0_14], %20 {strides = array<i32>} : memref<1x512xf32, #tpu.memory_space<vmem>>, vector<1x512xf32>,
    return
  }
  func.func @transform_0(%arg0: i32) -> (i32, i32) {
    %c0_i32 = arith.constant 0 : i32
    %c0_i32_0 = arith.constant 0 : i32
    return %c0_i32, %arg0 : i32, i32
  }
  func.func @transform_1(%arg0: i32) -> (i32, i32) {
    %c0_i32 = arith.constant 0 : i32
    %c0_i32_0 = arith.constant 0 : i32
    %c0_i32_1 = arith.constant 0 : i32
    return %c0_i32, %c0_i32_0 : i32, i32
  }
  func.func @transform_2(%arg0: i32) -> (i32, i32) {
    %c0_i32 = arith.constant 0 : i32
    %c0_i32_0 = arith.constant 0 : i32
    %c0_i32_1 = arith.constant 0 : i32
    return %c0_i32, %c0_i32_0 : i32, i32
  }
  func.func @transform_3(%arg0: i32) -> (i32, i32) {
    %c0_i32 = arith.constant 0 : i32
    %c0_i32_0 = arith.constant 0 : i32
    %c0_i32_1 = arith.constant 0 : i32
    return %c0_i32, %c0_i32_0 : i32, i32
  }
  func.func @transform_4(%arg0: i32) -> (i32, i32) {
    %c0_i32 = arith.constant 0 : i32
    %c0_i32_0 = arith.constant 0 : i32
    return %c0_i32, %arg0 : i32, i32
  }
}

</mosaic_0001>

<bundles_post_ra>
// kernel: tpu_custom_call.1
= control target key start
LH: loop header
LB: loop body
LE: loop exit
PB: predicated region body
PF: predicated region fallthrough
CT: control target
= control target key end

     0   :  { %vm89_vm0 = vcmask 1043456   ;;  %vm90_vm1 = vcmask 1044480   ;;  %v653_v1 = vmov 65535   ;;  %v654_v6 = vmov 0   ;;  %s800_s0 = inlined_call_operand.vmem [shape: bf16[9,512], index: 0, kind: input, shape index: {}]   ;;  %s801_s1 = inlined_call_operand.vmem [shape: bf16[64,9], index: 1, kind: input, shape index: {}]   ;;  %s802_s2 = inlined_call_operand.vmem [shape: bf16[32,64], index: 2, kind: input, shape index: {}]   ;;  %s803_s3 = inlined_call_operand.vmem [shape: f32[65,1], index: 3, kind: input, shape index: {}]   ;;  %s804_s4 = inlined_call_operand.hbm [shape: f32[1,512], index: 4, kind: output, shape index: {}]  }
   0x1   :  { %v619_v0 = vld [vmem:[%s800_s0 + $0x4] ss:$16 sps:$4 sm:$0x1f]   ;;  %v91_v2 = vsel %vm89_vm0, 4294967295, %v653_v1  ;;  %137 = vmatprep.mubr.bf16.mxu0 %v654_v6  ;;  %210 = vmatprep.mubr.bf16.mxu1 %v654_v6  ;;  %vm76_vm2 = vcmask 72704  }
   0x2   :  { %v621_v3 = vld [vmem:[%s800_s0 + $0xc] ss:$16 sps:$4 sm:$0x1f]   ;;  %v92_v4 = vsel %vm90_vm1, %v91_v2, 0  ;;  %617 = vset.pattern.permute.xlu0 %v654_v6  ;;  %618 = vset.pattern.permute.xlu1 %v654_v6  ;;  %v625_v12 = vld [vmem:[%s801_s1] sm:$0xff]  }
   0x3   :  { %v623_v5 = vld [vmem:[%s800_s0] ss:$16 sps:$4 sm:$0x1f]   ;;  %v97_v7 = vand.u32 %v619_v0, %v92_v4  ;;  %v103_v8 = vand.u32 %v621_v3, %v92_v4  ;;  %v624_v9 = vld [vmem:[%s800_s0 + $0x8] ss:$16 sps:$4 sm:$0x1f]  }
   0x4   :  { %v94_v10 = vand.u32 %v623_v5, %v92_v4  ;;  %v100_v11 = vand.u32 %v624_v9, %v92_v4 }
   0x5   :  { %119 = vmatprep.subr.bf16.mxu0 %v97_v7  ;;  %192 = vmatprep.subr.bf16.mxu1 %v103_v8 }
   0x6   :  { %120 = vmatpush1.bf16.msra.mxu0 %v94_v10  ;;  %193 = vmatpush1.bf16.msra.mxu1 %v100_v11 }
   0x7   :  { %9 = vsyncpa [#allocation3], 0  ;;  %v626_v13 = vld [vmem:[%s801_s1 + $0x8] sm:$0xff]   ;;  %v627_v14 = vld [vmem:[%s801_s1 + $0x10] sm:$0xff]   ;;  %vm333_vm3 = vcmask 523264  }
   0x8   :  { %v628_v15 = vld [vmem:[%s801_s1 + $0x18] sm:$0xff]   ;;  %v23_v16 = vld [vmem:[%s803_s3 + $0x20] sm:$0xff]  ;;  %v25_v17 = vld [vmem:[%s803_s3 + $0x30] sm:$0xff] }
   0x9   :  { %599 = vmatmul.mubr.msk.bf16.vlgmr.msra.gmra.mxu0 %vm76_vm2, %v625_v12  ;;  %603 = vmatmul.mubr.msk.bf16.vlgmr.msra.gmra.mxu1 %vm76_vm2, %v625_v12  ;;  %v24_v18 = vld [vmem:[%s803_s3 + $0x28] sm:$0xff]  ;;  %v26_v19 = vld [vmem:[%s803_s3 + $0x38] sm:$0xff]  ;;  %v19_v20 = vld [vmem:[%s803_s3] sm:$0xff] }
   0xa   :  { %147 = vmatprep.mubr.bf16.mxu0 %v654_v6  ;;  %220 = vmatprep.mubr.bf16.mxu1 %v654_v6  ;;  %v20_v21 = vld [vmem:[%s803_s3 + $0x8] sm:$0xff]  ;;  %v21_v22 = vld [vmem:[%s803_s3 + $0x10] sm:$0xff]  ;;  %v22_v23 = vld [vmem:[%s803_s3 + $0x18] sm:$0xff] }
   0xb   :  { %305 = vperm.xlu0 %617, %v23_v16   ;;  %315 = vperm.xlu1 %618, %v25_v17   ;;  %v27_v24 = vld [vmem:[%s803_s3 + $0x40] sm:$0x1] }
   0xf   :  { %310 = vperm.xlu0 %617, %v24_v18   ;;  %320 = vperm.xlu1 %618, %v26_v19  }
  0x11   :  { %600 = vmatmul.mubr.msk.bf16.gmra.mxu0 %vm76_vm2, %v626_v13  ;;  %604 = vmatmul.mubr.msk.bf16.gmra.mxu1 %vm76_vm2, %v626_v13 }
  0x12   :  { %157 = vmatprep.mubr.bf16.mxu0 %v654_v6  ;;  %230 = vmatprep.mubr.bf16.mxu1 %v654_v6 }
  0x13   :  { %464 = vperm.xlu0 %617, %v19_v20   ;;  %469 = vperm.xlu1 %618, %v20_v21  }
  0x17   :  { %474 = vperm.xlu0 %617, %v21_v22   ;;  %479 = vperm.xlu1 %618, %v22_v23  }
  0x19   :  { %601 = vmatmul.mubr.msk.bf16.gmra.mxu0 %vm76_vm2, %v627_v14  ;;  %605 = vmatmul.mubr.msk.bf16.gmra.mxu1 %vm76_vm2, %v627_v14 }
  0x1a   :  { %167 = vmatprep.mubr.bf16.mxu0 %v654_v6  ;;  %240 = vmatprep.mubr.bf16.mxu1 %v654_v6 }
  0x1b   :  { %536 = vperm.xlu0 %617, %v27_v24  }
  0x21   :  { %602 = vmatmul.mubr.msk.bf16.gmra.mxu0 %vm76_vm2, %v628_v15  ;;  %606 = vmatmul.mubr.msk.bf16.gmra.mxu1 %vm76_vm2, %v628_v15 }
  0x22   :  { %372 = vmatprep.mubr.bf16.mxu0 %v654_v6  ;;  %425 = vmatprep.mubr.bf16.mxu1 %v654_v6 }
  0xc9   :  { %v753_v25 = vpop.f32.mrf.mxu0  ;;  %v755_v26 = vpop.f32.mrf.mxu1 }
  0xcb   :  { %v757_v27 = vpop.f32.mrf.mxu0  ;;  %v759_v28 = vpop.f32.mrf.mxu1 }
  0xcd   :  { %v761_v29 = vpop.f32.mrf.mxu0  ;;  %v763_v30 = vpop.f32.mrf.mxu1 }
  0xcf   :  { %v765_v31 = vpop.f32.mrf.mxu0  ;;  %v767_v32 = vpop.f32.mrf.mxu1 }
  0xd0   :  { %v256_v22 = vmax.f32 %v765_v31, 0.0  ;;  %v255_v31 = vmax.f32 %v761_v29, 0.0  ;;  %v316_v29 = vpop.permute.xlu1 %315 }
  0xd1   :  { %v769_v33 = vpop.f32.mrf.mxu0  ;;  %v771_v34 = vpop.f32.mrf.mxu1 }
  0xd3   :  { %v151_v35 = vpop.f32.mrf.mxu0  ;;  %v224_v36 = vpop.f32.mrf.mxu1 }
  0xd4   :  { %v260_v17 = vmax.f32 %v151_v35, 0.0  ;;  %v262_v19 = vmax.f32 %v224_v36, 0.0  ;;  %v252_v35 = vmax.f32 %v757_v27, 0.0  ;;  %v261_v36 = vmax.f32 %v771_v34, 0.0 }
  0xd5   :  { %v773_v37 = vpop.f32.mrf.mxu0  ;;  %v775_v38 = vpop.f32.mrf.mxu1  ;;  %v253_v27 = vmax.f32 %v755_v26, 0.0 }
  0xd6   :  { %v263_v20 = vmax.f32 %v773_v37, 0.0  ;;  %v265_v23 = vmax.f32 %v775_v38, 0.0  ;;  %v254_v37 = vmax.f32 %v759_v28, 0.0  ;;  %v257_v38 = vmax.f32 %v763_v30, 0.0  ;;  %v629_v28 = vld [vmem:[%s802_s2] sm:$0xff]   ;;  %v306_v26 = vpop.permute.xlu0 %305 }
  0xd7   :  { %v155_v39 = vpop.f32.mrf.mxu0  ;;  %v228_v40 = vpop.f32.mrf.mxu1 }
  0xd8   :  { %v264_v10 = vmax.f32 %v155_v39, 0.0  ;;  %v266_v14 = vmax.f32 %v228_v40, 0.0  ;;  %v258_v40 = vmax.f32 %v767_v32, 0.0  ;;  %v293_v32 = vpack.c.bf16 %v265_v23, %v261_v36 }
  0xd9   :  { %v159_v41 = vpop.f32.mrf.mxu0  ;;  %v232_v42 = vpop.f32.mrf.mxu1 }
  0xda   :  { %v267_v15 = vmax.f32 %v159_v41, 0.0  ;;  %v269_v18 = vmax.f32 %v232_v42, 0.0  ;;  %v292_v24 = vpack.c.bf16 %v264_v10, %v260_v17  ;;  %v259_v41 = vmax.f32 %v769_v33, 0.0 }
  0xdb   :  { %v161_v43 = vpop.f32.mrf.mxu0  ;;  %v234_v44 = vpop.f32.mrf.mxu1  ;;  %v251_v33 = vmax.f32 %v753_v25, 0.0  ;;  %v630_v25 = vld [vmem:[%s802_s2 + $0x8] sm:$0xff]   ;;  %s656_s2 = smov [#allocation2]  }
  0xdc   :  { %v268_v2 = vmax.f32 %v161_v43, 0.0  ;;  %v270_v5 = vmax.f32 %v234_v44, 0.0  ;;  %v294_v43 = vpack.c.bf16 %v266_v14, %v262_v19  ;;  %v291_v42 = vpack.c.bf16 %v263_v20, %v259_v41  ;;  %s583_s24 = sshll.u32 %s656_s2, 4  ;;  %s584_s24 = int_to_ptr.vmem [resolvable:$true] %s583_s24 }
  0xdd   :  { %v163_v45 = vpop.f32.mrf.mxu0  ;;  %v236_v46 = vpop.f32.mrf.mxu1  ;;  %v288_v44 = vpack.c.bf16 %v256_v22, %v252_v35  ;;  %v287_v34 = vpack.c.bf16 %v255_v31, %v251_v33  ;;  %s631_s0 = scalar_lea.vmem %s584_s24, 64  ;;  %p636_p1 = scmp.lt.s32.totalorder %s584_s24, %s584_s24 }
  0xde   :  { %v271_v7 = vmax.f32 %v163_v45, 0.0  ;;  %v273_v11 = vmax.f32 %v236_v46, 0.0  ;;  %v290_v45 = vpack.c.bf16 %v258_v40, %v254_v37  ;;  %v289_v46 = vpack.c.bf16 %v257_v38, %v253_v27  ;;  %p632_p0 = scmp.ne.s32.totalorder %s584_s24, %s631_s0  ;;  %p637_p2 = scmp.lt.s32.totalorder %s631_s0, %s631_s0 }
  0xdf   :  { %v165_v47 = vpop.f32.mrf.mxu0  ;;  %v238_v48 = vpop.f32.mrf.mxu1 }
  0xe0   :  { %v272_v57 = vmax.f32 %v165_v47, 0.0  ;;  %v274_v62 = vmax.f32 %v238_v48, 0.0  ;;  %v295_v21 = vpack.c.bf16 %v271_v7, %v267_v15  ;;  %v297_v39 = vpack.c.bf16 %v273_v11, %v269_v18  ;;  %v311_v47 = vpop.permute.xlu0 %310  ;;  %p638_p3 = por %p637_p2, %p636_p1 }
  0xe1   :  { %v169_v49 = vpop.f32.mrf.mxu0  ;;  %v242_v50 = vpop.f32.mrf.mxu1 }
  0xe2   :  { %v275_v63 = vmax.f32 %v169_v49, 0.0  ;;  %v277_v3 = vmax.f32 %v242_v50, 0.0  ;;  %v296_v12 = vpack.c.bf16 %v272_v57, %v268_v2  ;;  %v298_v16 = vpack.c.bf16 %v274_v62, %v270_v5  ;;  %p639_p4 = pnand %p638_p3, %p632_p0 }
  0xe3   :  { %v171_v51 = vpop.f32.mrf.mxu0  ;;  %v244_v52 = vpop.f32.mrf.mxu1 }
  0xe4   :  { %v276_v58 = vmax.f32 %v171_v51, 0.0  ;;  %v278_v0 = vmax.f32 %v244_v52, 0.0  ;;  %v465_v62 = vpop.permute.xlu0 %464 }
  0xe5   :  { %v173_v53 = vpop.f32.mrf.mxu0  ;;  %v246_v54 = vpop.f32.mrf.mxu1 }
  0xe6   :  { %v279_v55 = vmax.f32 %v173_v53, 0.0  ;;  %v281_v59 = vmax.f32 %v246_v54, 0.0 }
  0xe7   :  { %v175_v56 = vpop.f32.mrf.mxu0  ;;  %v248_v61 = vpop.f32.mrf.mxu1 }
  0xe8   :  { %v280_v60 = vmax.f32 %v175_v56, 0.0  ;;  %v282_v1 = vmax.f32 %v248_v61, 0.0  ;;  %v299_v8 = vpack.c.bf16 %v279_v55, %v275_v63  ;;  %v301_v13 = vpack.c.bf16 %v281_v59, %v277_v3  ;;  %v321_v56 = vpop.permute.xlu1 %320  ;;  %v475_v41 = vpop.permute.xlu0 %474 }
  0xea   :  { %v300_v4 = vpack.c.bf16 %v280_v60, %v276_v58  ;;  %v302_v9 = vpack.c.bf16 %v282_v1, %v278_v0 }
  0xec   :  { %348 = vmatprep.subr.bf16.mxu0 %v300_v4  ;;  %401 = vmatprep.subr.bf16.mxu1 %v302_v9 }
  0xed   :  { %349 = vmatpush1.bf16.msra.mxu0 %v299_v8  ;;  %402 = vmatpush1.bf16.msra.mxu1 %v301_v13 }
  0xee   :  { %350 = vmatprep.subr.bf16.mxu0 %v296_v12  ;;  %403 = vmatprep.subr.bf16.mxu1 %v298_v16  ;;  %v470_v16 = vpop.permute.xlu1 %469 }
  0xf1   :  { %351 = vmatpush1.bf16.msra.mxu0 %v295_v21  ;;  %404 = vmatpush1.bf16.msra.mxu1 %v297_v39 }
  0xf2   :  { %352 = vmatprep.subr.bf16.mxu0 %v292_v24  ;;  %405 = vmatprep.subr.bf16.mxu1 %v294_v43 }
  0xf5   :  { %353 = vmatpush1.bf16.msra.mxu0 %v291_v42  ;;  %406 = vmatpush1.bf16.msra.mxu1 %v293_v32 }
  0xf6   :  { %354 = vmatprep.subr.bf16.mxu0 %v288_v44  ;;  %407 = vmatprep.subr.bf16.mxu1 %v290_v45 }
  0xf9   :  { %355 = vmatpush1.bf16.msra.mxu0 %v287_v34  ;;  %408 = vmatpush1.bf16.msra.mxu1 %v289_v46 }
  0xfc   :  { %609 = vmatmul.mubr.msk.bf16.vlgmr.msra.gmra.mxu0 %vm333_vm3, %v629_v28  ;;  %611 = vmatmul.mubr.msk.bf16.vlgmr.msra.gmra.mxu1 %vm333_vm3, %v629_v28 }
  0xfd   :  { %382 = vmatprep.mubr.bf16.mxu0 %v654_v6  ;;  %435 = vmatprep.mubr.bf16.mxu1 %v654_v6 }
 0x104   :  { %610 = vmatmul.mubr.msk.bf16.gmra.mxu0 %vm333_vm3, %v630_v25  ;;  %612 = vmatmul.mubr.msk.bf16.gmra.mxu1 %vm333_vm3, %v630_v25 }
 0x1bc   :  { %v374_v30 = vpop.f32.mrf.mxu0  ;;  %v427_v48 = vpop.f32.mrf.mxu1 }
 0x1bd   :  { %v375_v50 = vadd.f32 %v374_v30, %v306_v26  ;;  %v428_v51 = vadd.f32 %v427_v48, %v306_v26 }
 0x1be   :  { %v376_v49 = vpop.f32.mrf.mxu0  ;;  %v429_v52 = vpop.f32.mrf.mxu1 }
 0x1bf   :  { %v377_v53 = vadd.f32 %v376_v49, %v306_v26  ;;  %v430_v54 = vadd.f32 %v429_v52, %v306_v26  ;;  %v446_v58 = vmax.f32 %v375_v50, 0.0  ;;  %v448_v59 = vmax.f32 %v428_v51, 0.0 }
 0x1c0   :  { %v378_v55 = vpop.f32.mrf.mxu0  ;;  %v431_v6 = vpop.f32.mrf.mxu1 }
 0x1c1   :  { %v379_v57 = vadd.f32 %v378_v55, %v311_v47  ;;  %v432_v61 = vadd.f32 %v431_v6, %v311_v47  ;;  %v447_v63 = vmax.f32 %v377_v53, 0.0  ;;  %v449_v3 = vmax.f32 %v430_v54, 0.0 }
 0x1c2   :  { %v380_v60 = vpop.f32.mrf.mxu0  ;;  %v433_v0 = vpop.f32.mrf.mxu1  ;;  %v482_v14 = vmul.f32 %v465_v62, %v446_v58  ;;  %v484_v15 = vmul.f32 %v465_v62, %v448_v59 }
 0x1c3   :  { %v381_v1 = vadd.f32 %v380_v60, %v311_v47  ;;  %v450_v2 = vmax.f32 %v379_v57, 0.0  ;;  %v434_v4 = vadd.f32 %v433_v0, %v311_v47  ;;  %v452_v5 = vmax.f32 %v432_v61, 0.0  ;;  %v480_v47 = vpop.permute.xlu1 %479 }
 0x1c4   :  { %v384_v7 = vpop.f32.mrf.mxu0  ;;  %v437_v10 = vpop.f32.mrf.mxu1  ;;  %v483_v20 = vmul.f32 %v465_v62, %v447_v63  ;;  %v485_v24 = vmul.f32 %v465_v62, %v449_v3 }
 0x1c5   :  { %v451_v8 = vmax.f32 %v381_v1, 0.0  ;;  %v385_v9 = vadd.f32 %v384_v7, %v316_v29  ;;  %v453_v11 = vmax.f32 %v434_v4, 0.0  ;;  %v438_v12 = vadd.f32 %v437_v10, %v316_v29 }
 0x1c6   :  { %v386_v13 = vpop.f32.mrf.mxu0  ;;  %v439_v19 = vpop.f32.mrf.mxu1  ;;  %v486_v21 = vmul.f32 %v470_v16, %v450_v2  ;;  %v488_v40 = vmul.f32 %v470_v16, %v452_v5 }
 0x1c7   :  { %v454_v17 = vmax.f32 %v385_v9, 0.0  ;;  %v387_v18 = vadd.f32 %v386_v13, %v316_v29  ;;  %v456_v22 = vmax.f32 %v438_v12, 0.0  ;;  %v440_v23 = vadd.f32 %v439_v19, %v316_v29 }
 0x1c8   :  { %v388_v39 = vpop.f32.mrf.mxu0  ;;  %v441_v36 = vpop.f32.mrf.mxu1  ;;  %v487_v37 = vmul.f32 %v470_v16, %v451_v8  ;;  %v489_v44 = vmul.f32 %v470_v16, %v453_v11  ;;  %v498_v27 = vadd.f32 %v486_v21, %v482_v14  ;;  %v516_v26 = vadd.f32 %v488_v40, %v484_v15 }
 0x1c9   :  { %v455_v43 = vmax.f32 %v387_v18, 0.0  ;;  %v389_v35 = vadd.f32 %v388_v39, %v321_v56  ;;  %v490_v31 = vmul.f32 %v475_v41, %v454_v17  ;;  %v457_v42 = vmax.f32 %v440_v23, 0.0 }
 0x1ca   :  { %v442_v38 = vadd.f32 %v441_v36, %v321_v56  ;;  %v390_v32 = vpop.f32.mrf.mxu0  ;;  %v492_v33 = vmul.f32 %v475_v41, %v456_v22  ;;  %v443_v46 = vpop.f32.mrf.mxu1  ;;  %v507_v48 = vadd.f32 %v487_v37, %v483_v20  ;;  %v525_v52 = vadd.f32 %v489_v44, %v485_v24 }
 0x1cb   :  { %v458_v45 = vmax.f32 %v389_v35, 0.0  ;;  %v391_v34 = vadd.f32 %v390_v32, %v321_v56  ;;  %v491_v28 = vmul.f32 %v475_v41, %v455_v43  ;;  %v444_v29 = vadd.f32 %v443_v46, %v321_v56  ;;  %v537_v35 = vpop.permute.xlu0 %536 }
 0x1cc   :  { %v460_v25 = vmax.f32 %v442_v38, 0.0  ;;  %v493_v30 = vmul.f32 %v475_v41, %v457_v42  ;;  %v499_v51 = vadd.f32 %v498_v27, %v490_v31  ;;  %v517_v55 = vadd.f32 %v516_v26, %v492_v33 }
 0x1cd   :  { %v459_v49 = vmax.f32 %v391_v34, 0.0  ;;  %v494_v50 = vmul.f32 %v480_v47, %v458_v45  ;;  %v461_v53 = vmax.f32 %v444_v29, 0.0  ;;  %v508_v58 = vadd.f32 %v507_v48, %v491_v28 }
 0x1ce   :  { %v496_v54 = vmul.f32 %v480_v47, %v460_v25  ;;  %v526_v61 = vadd.f32 %v525_v52, %v493_v30  ;;  %v655_v12 = vmov 1966171168   ;;  %v552_v14 = vlaneseq }
 0x1cf   :  { %v495_v6 = vmul.f32 %v480_v47, %v459_v49  ;;  %v500_v57 = vadd.f32 %v499_v51, %v494_v50  ;;  %v497_v59 = vmul.f32 %v480_v47, %v461_v53  ;;  %v550_v13 = vunpack.c.l.s4 %v655_v12 }
 0x1d0   :  { %v518_v60 = vadd.f32 %v517_v55, %v496_v54  ;;  %v553_v24 = vshrl.u32 %v552_v14, 7  ;;  %vm574_vm4 = vcmp.lt.s32.totalorder %v552_v14, 512 }
 0x1d1   :  { %v501_v62 = vrot.slane %v500_v57, 4  ;;  %v509_v63 = vadd.f32 %v508_v58, %v495_v6  ;;  %v527_v56 = vadd.f32 %v526_v61, %v497_v59  ;;  %v551_v23 = vunpack.c.0.s8 %v550_v13 }
 0x1d2   :  { %v519_v0 = vrot.slane %v518_v60, 4 }
 0x1d3   :  { %v502_v1 = vadd.f32 %v501_v62, %v500_v57  ;;  %v510_v2 = vrot.slane %v509_v63, 4  ;;  %v528_v4 = vrot.slane %v527_v56, 4  ;;  %v554_v31 = vsub.s32 %v551_v23, %v553_v24 }
 0x1d4   :  { %v520_v3 = vadd.f32 %v519_v0, %v518_v60 }
 0x1d5   :  { %v511_v5 = vadd.f32 %v510_v2, %v509_v63  ;;  %v503_v7 = vrot.slane %v502_v1, 2  ;;  %v529_v8 = vadd.f32 %v528_v4, %v527_v56 }
 0x1d6   :  { %v521_v9 = vrot.slane %v520_v3, 2 }
 0x1d7   :  { %v504_v10 = vadd.f32 %v503_v7, %v502_v1  ;;  %v512_v11 = vrot.slane %v511_v5, 2  ;;  %v530_v16 = vrot.slane %v529_v8, 2 }
 0x1d8   :  { %v522_v15 = vadd.f32 %v521_v9, %v520_v3 }
 0x1d9   :  { %v505_v17 = vrot.slane %v504_v10, 1  ;;  %v513_v18 = vadd.f32 %v512_v11, %v511_v5  ;;  %v531_v20 = vadd.f32 %v530_v16, %v529_v8 }
 0x1da   :  { %v523_v19 = vrot.slane %v522_v15, 1 }
 0x1db   :  { %v506_v21 = vadd.f32 %v505_v17, %v504_v10  ;;  %v514_v22 = vrot.slane %v513_v18, 1  ;;  %v532_v40 = vrot.slane %v531_v20, 1 }
 0x1dc   :  { %v524_v39 = vadd.f32 %v523_v19, %v522_v15 }
 0x1dd   :  { %v515_v41 = vadd.f32 %v514_v22, %v513_v18  ;;  %v533_v43 = vadd.f32 %v532_v40, %v531_v20  ;;  %v539_v36 = vadd.f32 %v537_v35, %v506_v21 }
 0x1de   :  { %v541_v42 = vadd.f32 %v537_v35, %v524_v39 }
 0x1df   :  { %v540_v37 = vadd.f32 %v537_v35, %v515_v41  ;;  %v542_v38 = vadd.f32 %v537_v35, %v533_v43 }
 0x1e1   :  { %v547_v44 = vcombine.low %v539_v36, %v540_v37  ;;  %v548_v32 = vcombine.low %v541_v42, %v542_v38 }
 0x1e3   :  { %v555_v33 = vrot.slane %v547_v44, %v554_v31  ;;  %v562_v45 = vrot.slane %v548_v32, %v554_v31 }
 0x1e5   :  { %v563_v27 = vcombine.low %v555_v33, %v562_v45 }
 0x1e7   :  { %v570_v34 = vrot.slane %v563_v27, %v554_v31 }
 0x1e9   :  { %576 = vst.msk [vmem:[#allocation2] sm:$0xf] %vm574_vm4, %v570_v34 }
 0x1ea   :  { %642 = shalt.err (!%p639_p4)
}
 0x1eb   :  { %586 = dma.vmem_to_hbm [thread:$0]  %s584_s24, 64, %s804_s4, [#allocation3]  }
 0x1ec   :  { %651 = dma.done.wait [#allocation3], 64  }
 0x1ed   :  { %652 = vsyncadd [#allocation3], 4294967232 }
 0x1ee   :  { %590 = vsyncpa [#allocation3], 1 }

</bundles_post_ra>
